<compile_context>
chip_gen: v5e
topology: v5e:2x2
jax: 0.10.0
libtpu: 0.0.40
codegen_flags: <defaults>
</compile_context>

<pallas_src>
import numpy as np
import jax
import jax.numpy as jnp
from jax.experimental import pallas as pl
from jax.experimental.pallas import tpu as pltpu

_INV_SQRT2 = np.float32(1.0 / np.sqrt(2.0))


def _haar_dwt_kernel(e_ref, o_ref, ca_ref, cd_ref):
    # e_ref, o_ref:  (TILE_M, TILE_H)  even / odd samples
    # ca_ref, cd_ref:(TILE_M, TILE_H)  approximation / detail coefficients
    e = e_ref[...]
    o = o_ref[...]
    ca_ref[...] = (e + o) * _INV_SQRT2
    cd_ref[...] = (e - o) * _INV_SQRT2


def _pick_tile(n, align, max_tile):
    """Largest multiple of `align` that divides n and is <= max_tile, else n."""
    if n % align != 0 or n <= align:
        return n
    t = min(max_tile, n)
    t -= t % align
    while n % t != 0:
        t -= align
    return t


def wavelet_transform_layer(x):
    """Haar (db1) level-1 DWT. x: (B, C, T) -> (B, 2, C, T//2) float32."""
    B, C, T = x.shape
    assert T % 2 == 0, "time_steps must be even for db1 level-1"
    half = T // 2
    M = B * C

    xf = x.astype(jnp.float32)
    # Deinterleave even/odd samples in the wrapper (strided HBM pass via XLA)
    # and fold batch+channels into the row (sublane) dimension.
    x2 = xf.reshape(M, half, 2)
    x_even = x2[:, :, 0]  # (M, half)
    x_odd = x2[:, :, 1]   # (M, half)

    tm = _pick_tile(M, 8, 512)      # sublane-aligned row tile
    th = _pick_tile(half, 128, 2048)  # lane-dense column tile
    grid = (M // tm, half // th)

    bytes_accessed = 4 * M * half * 4  # 2 reads + 2 writes, f32
    cost = pl.CostEstimate(flops=4 * M * half, transcendentals=0,
                           bytes_accessed=bytes_accessed)

    ca, cd = pl.pallas_call(
        _haar_dwt_kernel,
        out_shape=(jax.ShapeDtypeStruct((M, half), jnp.float32),
                   jax.ShapeDtypeStruct((M, half), jnp.float32)),
        grid=grid,
        in_specs=[
            pl.BlockSpec((tm, th), lambda i, j: (i, j)),
            pl.BlockSpec((tm, th), lambda i, j: (i, j)),
        ],
        out_specs=(
            pl.BlockSpec((tm, th), lambda i, j: (i, j)),
            pl.BlockSpec((tm, th), lambda i, j: (i, j)),
        ),
        compiler_params=pltpu.CompilerParams(
            dimension_semantics=("parallel", "parallel")),
        cost_estimate=cost,
    )(x_even, x_odd)

    # (B, 2, C, half): stack [cA, cD] along axis 1 (pure layout, done by XLA).
    return jnp.stack([ca.reshape(B, C, half), cd.reshape(B, C, half)], axis=1)


if __name__ == "__main__":
    key = jax.random.PRNGKey(0)
    B, C, T = 2, 4, 16  # (batch, channels, time_steps)
    x = jax.random.normal(key, (B, C, T), dtype=jnp.float32)

    out = wavelet_transform_layer(x)
    out = jax.block_until_ready(out)

    # Reference (pure numpy, same Haar/db1 level-1 semantics as pywt.wavedec).
    xn = np.asarray(x)
    even, odd = xn[..., 0::2], xn[..., 1::2]
    ca_ref = (even + odd) / np.sqrt(2.0)
    cd_ref = (even - odd) / np.sqrt(2.0)
    ref = np.stack([ca_ref, cd_ref], axis=1)  # (B, 2, C, T//2)

    assert out.shape == (B, 2, C, T // 2), out.shape
    np.testing.assert_allclose(np.asarray(out), ref, rtol=1e-5, atol=1e-5)
    print("KERNEL_OK")
</pallas_src>

<mosaic_0001>
module attributes {stable_mosaic.version = 11 : i64} {
  func.func @_haar_dwt_kernel(%arg0: i32, %arg1: i32, %arg2: memref<8x8xf32, #tpu.memory_space<vmem>>, %arg3: memref<8x8xf32, #tpu.memory_space<vmem>>, %arg4: memref<8x8xf32, #tpu.memory_space<vmem>>, %arg5: memref<8x8xf32, #tpu.memory_space<vmem>>) attributes {dimension_semantics = [#tpu.dimension_semantics<parallel>, #tpu.dimension_semantics<parallel>], iteration_bounds = array<i64: 1, 1>, scalar_prefetch = 0 : i64, scratch_operands = 0 : i64, tpu.core_type = #tpu.core_type<tc>, window_params = [{transform_indices = @transform_0, window_bounds = array<i64: 8, 8>}, {transform_indices = @transform_1, window_bounds = array<i64: 8, 8>}, {transform_indices = @transform_2, window_bounds = array<i64: 8, 8>}, {transform_indices = @transform_3, window_bounds = array<i64: 8, 8>}]} {
    %c0 = arith.constant 0 : index
    %c0_0 = arith.constant 0 : index
    %0 = vector.load %arg2[%c0, %c0_0] : memref<8x8xf32, #tpu.memory_space<vmem>>, vector<8x8xf32>
    %c0_1 = arith.constant 0 : index
    %c0_2 = arith.constant 0 : index
    %1 = vector.load %arg3[%c0_1, %c0_2] : memref<8x8xf32, #tpu.memory_space<vmem>>, vector<8x8xf32>
    %2 = arith.addf %0, %1 : vector<8x8xf32>
    %cst = arith.constant 0.707106769 : f32
    %3 = vector.broadcast %cst : f32 to vector<8x8xf32>
    %4 = arith.mulf %2, %3 : vector<8x8xf32>
    %c0_3 = arith.constant 0 : index
    %c0_4 = arith.constant 0 : index
    %5 = vector.load %arg4[%c0_3, %c0_4] : memref<8x8xf32, #tpu.memory_space<vmem>>, vector<8x8xf32>
    tpu.vector_store %arg4[%c0_3, %c0_4], %4 {strides = array<i32>} : memref<8x8xf32, #tpu.memory_space<vmem>>, vector<8x8xf32>,
    %6 = arith.subf %0, %1 : vector<8x8xf32>
    %cst_5 = arith.constant 0.707106769 : f32
    %7 = vector.broadcast %cst_5 : f32 to vector<8x8xf32>
    %8 = arith.mulf %6, %7 : vector<8x8xf32>
    %c0_6 = arith.constant 0 : index
    %c0_7 = arith.constant 0 : index
    %9 = vector.load %arg5[%c0_6, %c0_7] : memref<8x8xf32, #tpu.memory_space<vmem>>, vector<8x8xf32>
    tpu.vector_store %arg5[%c0_6, %c0_7], %8 {strides = array<i32>} : memref<8x8xf32, #tpu.memory_space<vmem>>, vector<8x8xf32>,
    return
  }
  func.func @transform_0(%arg0: i32, %arg1: i32) -> (i32, i32) {
    %c0_i32 = arith.constant 0 : i32
    return %arg0, %arg1 : i32, i32
  }
  func.func @transform_1(%arg0: i32, %arg1: i32) -> (i32, i32) {
    %c0_i32 = arith.constant 0 : i32
    return %arg0, %arg1 : i32, i32
  }
  func.func @transform_2(%arg0: i32, %arg1: i32) -> (i32, i32) {
    %c0_i32 = arith.constant 0 : i32
    return %arg0, %arg1 : i32, i32
  }
  func.func @transform_3(%arg0: i32, %arg1: i32) -> (i32, i32) {
    %c0_i32 = arith.constant 0 : i32
    return %arg0, %arg1 : i32, i32
  }
}

</mosaic_0001>

<bundles_post_ra>
// kernel: tpu_custom_call.1
= control target key start
LH: loop header
LB: loop body
LE: loop exit
PB: predicated region body
PF: predicated region fallthrough
CT: control target
= control target key end

     0   :  { %9 = vsyncpa [#allocation3], 0  ;;  %s230_s0 = inlined_call_operand.hbm [shape: f32[8,8], index: 0, kind: input, shape index: {}]   ;;  %s231_s1 = inlined_call_operand.hbm [shape: f32[8,8], index: 1, kind: input, shape index: {}]   ;;  %s232_s2 = inlined_call_operand.hbm [shape: f32[8,8], index: 2, kind: output, shape index: {0}]   ;;  %s233_s3 = inlined_call_operand.hbm [shape: f32[8,8], index: 3, kind: output, shape index: {1}]  }
   0x1   :  { %10 = vsyncpa [#allocation6], 0 }
   0x2   :  { %11 = vsyncpa [#allocation4], 0 }
   0x3   :  { %12 = vsyncpa [#allocation9], 0  ;;  %s18_s14 = sshll.u32 %s230_s0, 4  ;;  %s194_s15 = smov [#allocation2]   ;;  %s19_s14 = int_to_ptr.hbm [resolvable:$true] %s18_s14 }
   0x4   :  { %s20_s16 = sshll.u32 %s194_s15, 4  ;;  %s29_s19 = sshll.u32 %s231_s1, 4  ;;  %s21_s16 = int_to_ptr.vmem [resolvable:$true] %s20_s16  ;;  %s30_s19 = int_to_ptr.hbm [resolvable:$true] %s29_s19 }
   0x5   :  { %23 = dma.hbm_to_vmem [thread:$0]  %s19_s14, 128, %s21_s16, [#allocation3]  }
   0x6   :  { %s195_s20 = smov [#allocation5]  }
   0x7   :  { %s31_s21 = sshll.u32 %s195_s20, 4  ;;  %s32_s21 = int_to_ptr.vmem [resolvable:$true] %s31_s21 }
   0x8   :  { %34 = dma.hbm_to_vmem [thread:$0]  %s30_s19, 128, %s32_s21, [#allocation6]  }
   0x9   :  { %186 = dma.done.wait [#allocation3], 128  }
   0xa   :  { %187 = vsyncadd [#allocation3], 4294967168 }
   0xb   :  { %188 = dma.done.wait [#allocation6], 128  }
   0xc   :  { %189 = vsyncadd [#allocation6], 4294967168  ;;  %v43_v0 = vld [vmem:[#allocation2] sm:$0xff]  ;;  %v44_v1 = vld [vmem:[#allocation5] sm:$0xff]  ;;  %s196_s0 = smov [#allocation7]   ;;  %s59_s25 = sshll.u32 %s232_s2, 4  ;;  %s60_s25 = int_to_ptr.hbm [resolvable:$true] %s59_s25 }
   0xd   :  { %s57_s22 = sshll.u32 %s196_s0, 4  ;;  %v45_v2 = vadd.f32 %v44_v1, %v43_v0  ;;  %v49_v3 = vsub.f32 %v43_v0, %v44_v1  ;;  %s197_s1 = smov [#allocation8]   ;;  %vm47_vm0 = vcmask 64512   ;;  %s58_s22 = int_to_ptr.vmem [resolvable:$true] %s57_s22 }
   0xe   :  { %s68_s26 = sshll.u32 %s197_s1, 4  ;;  %s70_s29 = sshll.u32 %s233_s3, 4  ;;  %s69_s26 = int_to_ptr.vmem [resolvable:$true] %s68_s26  ;;  %s71_s29 = int_to_ptr.hbm [resolvable:$true] %s70_s29 }
   0xf   :  { %v46_v4 = vmul.f32 0.70710677, %v45_v2  ;;  %v50_v5 = vmul.f32 0.70710677, %v49_v3 }
  0x11   :  { %48 = vst.msk [vmem:[#allocation7] sm:$0xff] %vm47_vm0, %v46_v4 }
  0x12   :  { %51 = vst.msk [vmem:[#allocation8] sm:$0xff] %vm47_vm0, %v50_v5  ;;  %62 = dma.vmem_to_hbm [thread:$0]  %s58_s22, 128, %s60_s25, [#allocation4]  }
  0x13   :  { %73 = dma.vmem_to_hbm [thread:$0]  %s69_s26, 128, %s71_s29, [#allocation9]  }
  0x14   :  { %190 = dma.done.wait [#allocation4], 128  }
  0x15   :  { %191 = vsyncadd [#allocation4], 4294967168 }
  0x16   :  { %192 = dma.done.wait [#allocation9], 128  }
  0x17   :  { %193 = vsyncadd [#allocation9], 4294967168 }
  0x18   :  { %82 = vsyncpa [#allocation3], 1 }
  0x19   :  { %83 = vsyncpa [#allocation6], 1 }
  0x1a   :  { %84 = vsyncpa [#allocation4], 1 }
  0x1b   :  { %85 = vsyncpa [#allocation9], 1 }

</bundles_post_ra>
